<compile_context>
chip_gen: v7x
topology: tpu7x:2x2x1
jax: 0.10.0
libtpu: 0.0.40
codegen_flags: <defaults>
</compile_context>

<pallas_src>
import jax
import jax.numpy as jnp
from jax.experimental import pallas as pl
from jax.experimental.pallas import tpu as pltpu

REPAYSTA_NUM = 8
REPAYSTA_DIM = 32
NUM_FIN, NUM_FOUT = 2, 32
REPAY_FIN, REPAY_FOUT = 64, 128
CAT_DIM = REPAYSTA_NUM + NUM_FOUT          # 40: one-hot (8) + num branch (32)
BN_EPS = 1e-5
HI = jax.lax.Precision.HIGHEST


def _mish_fast(x):
    # mish(x) = x * tanh(softplus(x)).  With t = exp(min(x, 20)):
    #   tanh(softplus(x)) = u / (u + 2),  u = t*(t+2)
    # For x > 20, u ~ 2.3e17 so u+2 == u in f32 and the ratio is exactly 1,
    # i.e. the clamp alone reproduces PyTorch's softplus threshold behaviour.
    t = jnp.exp(jnp.minimum(x, 20.0))
    u = t * (t + 2.0)
    d = u + 2.0
    r = pl.reciprocal(d, approx=True)      # EUP slot
    r = r * (2.0 - d * r)                  # one Newton step -> ~f32 exact
    return (x * u) * r


def repay_edge_encoder_kernel(x_ref, w1b1_ref, p_ref, o_ref):
    x = x_ref[...]                                   # (tile, 3) f32
    tile = x.shape[0]

    # --- repaySta index: clamp > 7 -> 7, truncate, one-hot over 40 lanes ------
    idx_f = x[:, 0:1]
    idx_f = jnp.where(idx_f > 7.0, 7.0, idx_f)
    idx = idx_f.astype(jnp.int32)                    # trunc-toward-zero like .long()
    iota = jax.lax.broadcasted_iota(jnp.int32, (tile, CAT_DIM), 1)
    onehot = (iota == idx).astype(jnp.float32)       # nonzero only in cols 0..7

    # --- numeric features: clip then signed log10 (single log pass) -----------
    num = jnp.clip(x[:, 1:3], -9999999.0, 9999999.0)
    num = jnp.where(num < 0.0, -1.0, 1.0) * jnp.log10(1.0 + jnp.abs(num))

    # --- num_dense Linear(2->32) as two VPU broadcast FMAs into cols 8..39 ----
    # w1b1_ref is (3, 40): cols 0..7 are zeros, cols 8..39 hold [W1; W1; b1].
    w1b1 = w1b1_ref[...]
    h1 = (num[:, 0:1] * w1b1[0:1, :]
          + num[:, 1:2] * w1b1[1:2, :]
          + w1b1[2:3, :])                            # (tile, 40); cols 0..7 exactly 0
    act = onehot + _mish_fast(h1)                    # mish(0) == 0, so one-hot intact
    # BN1's eval-mode affine is folded into rows 8..39 of p_ref and into b2'.

    # --- single fused K=40 matmul + bias + Mish + BN2 (eval affine) -----------
    w40 = p_ref[0:CAT_DIM, :]                        # (40, 128): [emb@W2_emb ; W2']
    c = p_ref[CAT_DIM:CAT_DIM + 3, :]                # (3, 128): [b2'; scale2; shift2]
    h2 = jnp.dot(act, w40, preferred_element_type=jnp.float32)
    h2 = _mish_fast(h2 + c[0:1, :])
    o_ref[...] = (h2 * c[1:2, :] + c[2:3, :]).astype(o_ref.dtype)
    # TODO(synk): Dropout(0.1) and training-mode (batch-stat) BatchNorm are not
    #             modeled; this kernel implements eval-mode semantics.


def prepare_params(params):
    """Fold embedding + BN1/BN2 into the second Linear; pack everything."""
    (emb, w1, b1, g1, be1, m1, v1, w2, b2, g2, be2, m2, v2) = params
    s1 = g1 / jnp.sqrt(v1 + BN_EPS)                  # (1, 32) BN1 scale
    t1 = be1 - m1 * s1                               # (1, 32) BN1 shift
    w2_emb = w2[:REPAYSTA_DIM, :]                    # (32, 128) acts on embedding
    w2_num = w2[REPAYSTA_DIM:, :]                    # (32, 128) acts on num branch

    fused_emb = jnp.dot(emb, w2_emb, precision=HI)   # (8, 128)
    w2p = s1.reshape(REPAYSTA_DIM, 1) * w2_num       # BN1 scale folded in
    b2p = b2 + jnp.dot(t1, w2_num, precision=HI)     # BN1 shift folded in  (1, 128)

    scale2 = g2 / jnp.sqrt(v2 + BN_EPS)              # (1, 128)
    shift2 = be2 - m2 * scale2                       # (1, 128)

    w1b1 = jnp.concatenate([w1, b1], axis=0)         # (3, 32)
    w1b1_40 = jnp.pad(w1b1, ((0, 0), (REPAYSTA_NUM, 0)))     # (3, 40), cols 0..7 = 0
    packed = jnp.concatenate([fused_emb, w2p, b2p, scale2, shift2], axis=0)  # (43,128)
    return w1b1_40, packed


def _round_up(a, b):
    return (a + b - 1) // b * b


def repay_edge_encoder(x, params, tn=4096):
    N, F = x.shape
    assert F == 3
    w1b1_40, packed = prepare_params(params)

    # Tile choice: big tile to amortize ~0.35us/step grid overhead, but aim for
    # >= 8 grid steps (>= 4 per TensorCore on v7x) when N allows.  Multiple of 8.
    tile = min(tn, max(8, _round_up(pl.cdiv(N, 8), 8)))
    grid = pl.cdiv(N, tile)

    cost = pl.CostEstimate(
        flops=2 * N * CAT_DIM * REPAY_FOUT,
        transcendentals=N * (REPAY_FOUT + NUM_FOUT + 2),
        bytes_accessed=N * (3 * 4 + REPAY_FOUT * 4),
    )

    out = pl.pallas_call(
        repay_edge_encoder_kernel,
        out_shape=jax.ShapeDtypeStruct((N, REPAY_FOUT), jnp.float32),
        grid_spec=pltpu.PrefetchScalarGridSpec(
            num_scalar_prefetch=0,
            grid=(grid,),
            in_specs=[
                pl.BlockSpec((tile, 3), lambda i: (i, 0)),                   # x rows
                pl.BlockSpec((3, CAT_DIM), lambda i: (0, 0)),                # [0|W1;b1]
                pl.BlockSpec((CAT_DIM + 3, REPAY_FOUT), lambda i: (0, 0)),   # packed
            ],
            out_specs=pl.BlockSpec((tile, REPAY_FOUT), lambda i: (i, 0)),
        ),
        compiler_params=pltpu.CompilerParams(
            dimension_semantics=("parallel",),
            vmem_limit_bytes=32 * 1024 * 1024,
        ),
        cost_estimate=cost,
    )(x, w1b1_40, packed)
    return out


def init_params(key):
    ks = jax.random.split(key, 5)
    emb = jax.random.normal(ks[0], (REPAYSTA_NUM, REPAYSTA_DIM), jnp.float32)
    w1 = jax.random.normal(ks[1], (NUM_FIN, NUM_FOUT), jnp.float32) / jnp.sqrt(float(NUM_FIN))
    b1 = jax.random.normal(ks[2], (1, NUM_FOUT), jnp.float32) * 0.1
    w2 = jax.random.normal(ks[3], (REPAY_FIN, REPAY_FOUT), jnp.float32) / jnp.sqrt(float(REPAY_FIN))
    b2 = jax.random.normal(ks[4], (1, REPAY_FOUT), jnp.float32) * 0.1
    # BatchNorm with non-trivial running stats so the folds are exercised.
    g1 = jnp.ones((1, NUM_FOUT), jnp.float32) * 1.1
    be1 = jnp.ones((1, NUM_FOUT), jnp.float32) * 0.05
    m1 = jnp.ones((1, NUM_FOUT), jnp.float32) * 0.2
    v1 = jnp.ones((1, NUM_FOUT), jnp.float32) * 0.9
    g2 = jnp.ones((1, REPAY_FOUT), jnp.float32) * 0.95
    be2 = jnp.ones((1, REPAY_FOUT), jnp.float32) * -0.03
    m2 = jnp.ones((1, REPAY_FOUT), jnp.float32) * 0.1
    v2 = jnp.ones((1, REPAY_FOUT), jnp.float32) * 1.2
    return (emb, w1, b1, g1, be1, m1, v1, w2, b2, g2, be2, m2, v2)


def _mish_ref(x):
    sp = jnp.where(x > 20.0, x, jnp.log1p(jnp.exp(jnp.minimum(x, 20.0))))
    return x * jnp.tanh(sp)


def _bn_eval(x, gamma, beta, mean, var):
    return (x - mean) * (gamma / jnp.sqrt(var + BN_EPS)) + beta


def reference(x, params):
    """Pure-JAX eval-mode forward with the original (unfused) parameters."""
    (emb_t, w1, b1, g1, be1, m1, v1, w2, b2, g2, be2, m2, v2) = params
    idx = jnp.where(x[:, 0] > 7.0, 7.0, x[:, 0]).astype(jnp.int32)
    emb = emb_t[idx]
    num = jnp.clip(x[:, 1:3], -9999999.0, 9999999.0)
    num = jnp.where(num < 0.0, -jnp.log10(1.0 - num), jnp.log10(1.0 + num))
    h1 = _bn_eval(_mish_ref(jnp.dot(num, w1, precision=HI) + b1), g1, be1, m1, v1)
    cat = jnp.concatenate([emb, h1], axis=-1)
    h2 = _bn_eval(_mish_ref(jnp.dot(cat, w2, precision=HI) + b2), g2, be2, m2, v2)
    return h2


if __name__ == "__main__":
    key = jax.random.PRNGKey(0)
    kx, kn, kp = jax.random.split(key, 3)
    params = init_params(kp)

    def make_x(n):
        idx_col = jnp.floor(jax.random.uniform(kx, (n, 1), minval=0.0, maxval=10.0))
        num_cols = jax.random.normal(kn, (n, 2)) * 1.0e4
        return jnp.concatenate([idx_col, num_cols], axis=-1).astype(jnp.float32)

    # Even (tile-divisible) case.
    N = 16
    x = make_x(N)
    out = jax.block_until_ready(repay_edge_encoder(x, params))
    ref = reference(x, params)
    assert out.shape == (N, REPAY_FOUT)
    assert jnp.allclose(out, ref, atol=5e-4, rtol=5e-4), "mismatch (even N) vs reference"

    # Ragged case: exercises Pallas last-block masking (no host pad / slice).
    N2 = 13
    x2 = make_x(N2)
    out2 = jax.block_until_ready(repay_edge_encoder(x2, params))
    ref2 = reference(x2, params)
    assert out2.shape == (N2, REPAY_FOUT)
    assert jnp.allclose(out2, ref2, atol=5e-4, rtol=5e-4), "mismatch (ragged N) vs reference"

    print("KERNEL_OK")
</pallas_src>

<mosaic_0001>
module attributes {stable_mosaic.version = 11 : i64} {
  func.func @repay_edge_encoder_kernel(%arg0: i32, %arg1: memref<8x3xf32, #tpu.memory_space<vmem>>, %arg2: memref<3x40xf32, #tpu.memory_space<vmem>>, %arg3: memref<43x128xf32, #tpu.memory_space<vmem>>, %arg4: memref<8x128xf32, #tpu.memory_space<vmem>>) attributes {dimension_semantics = [#tpu.dimension_semantics<parallel>], iteration_bounds = array<i64: 2>, scalar_prefetch = 0 : i64, scratch_operands = 0 : i64, tpu.core_type = #tpu.core_type<tc>, window_params = [{transform_indices = @transform_0, window_bounds = array<i64: 8, 3>}, {pipeline_mode = #tpu.pipeline_mode<synchronous>, transform_indices = @transform_1, window_bounds = array<i64: 3, 40>}, {pipeline_mode = #tpu.pipeline_mode<synchronous>, transform_indices = @transform_2, window_bounds = array<i64: 43, 128>}, {transform_indices = @transform_3, window_bounds = array<i64: 8, 128>}]} {
    %c0 = arith.constant 0 : index
    %c0_0 = arith.constant 0 : index
    %0 = vector.load %arg1[%c0, %c0_0] : memref<8x3xf32, #tpu.memory_space<vmem>>, vector<8x3xf32>
    %1 = vector.extract_strided_slice %0 {offsets = [0, 0], sizes = [8, 1], strides = [1, 1]} : vector<8x3xf32> to vector<8x1xf32>
    %cst = arith.constant 7.000000e+00 : f32
    %2 = vector.broadcast %cst : f32 to vector<8x1xf32>
    %3 = arith.cmpf ogt, %1, %2 : vector<8x1xf32>
    %cst_1 = arith.constant 7.000000e+00 : f32
    %4 = vector.broadcast %cst_1 : f32 to vector<8x1xf32>
    %5 = arith.select %3, %4, %1 : vector<8x1xi1>, vector<8x1xf32>
    %6 = arith.fptosi %5 : vector<8x1xf32> to vector<8x1xi32>
    %7 = tpu.iota {dimensions = array<i32: 1>} : vector<8x40xi32>
    %8 = vector.broadcast %6 : vector<8x1xi32> to vector<8x40xi32>
    %9 = arith.cmpi eq, %7, %8 : vector<8x40xi32>
    %10 = arith.extui %9 : vector<8x40xi1> to vector<8x40xi32>
    %11 = arith.sitofp %10 : vector<8x40xi32> to vector<8x40xf32>
    %12 = vector.extract_strided_slice %0 {offsets = [0, 1], sizes = [8, 2], strides = [1, 1]} : vector<8x3xf32> to vector<8x2xf32>
    %cst_2 = arith.constant 0xCB18967F : f32
    %cst_3 = arith.constant 0x4B18967F : f32
    %13 = vector.broadcast %cst_2 : f32 to vector<8x2xf32>
    %14 = arith.maximumf %13, %12 : vector<8x2xf32>
    %15 = vector.broadcast %cst_3 : f32 to vector<8x2xf32>
    %16 = arith.minimumf %15, %14 : vector<8x2xf32>
    %cst_4 = arith.constant 0.000000e+00 : f32
    %17 = vector.broadcast %cst_4 : f32 to vector<8x2xf32>
    %18 = arith.cmpf olt, %16, %17 : vector<8x2xf32>
    %cst_5 = arith.constant -1.000000e+00 : f32
    %cst_6 = arith.constant 1.000000e+00 : f32
    %19 = vector.broadcast %cst_5 : f32 to vector<8x2xf32>
    %20 = vector.broadcast %cst_6 : f32 to vector<8x2xf32>
    %21 = arith.select %18, %19, %20 : vector<8x2xi1>, vector<8x2xf32>
    %22 = math.absf %16 : vector<8x2xf32>
    %cst_7 = arith.constant 1.000000e+00 : f32
    %23 = vector.broadcast %cst_7 : f32 to vector<8x2xf32>
    %24 = arith.addf %23, %22 : vector<8x2xf32>
    %25 = math.log %24 : vector<8x2xf32>
    %cst_8 = arith.constant 0.434294492 : f32
    %26 = vector.broadcast %cst_8 : f32 to vector<8x2xf32>
    %27 = arith.mulf %25, %26 : vector<8x2xf32>
    %28 = arith.mulf %21, %27 : vector<8x2xf32>
    %c0_9 = arith.constant 0 : index
    %c0_10 = arith.constant 0 : index
    %29 = vector.load %arg2[%c0_9, %c0_10] : memref<3x40xf32, #tpu.memory_space<vmem>>, vector<3x40xf32>
    %30 = vector.extract_strided_slice %28 {offsets = [0, 0], sizes = [8, 1], strides = [1, 1]} : vector<8x2xf32> to vector<8x1xf32>
    %31 = vector.extract_strided_slice %29 {offsets = [0, 0], sizes = [1, 40], strides = [1, 1]} : vector<3x40xf32> to vector<1x40xf32>
    %32 = vector.broadcast %30 : vector<8x1xf32> to vector<8x40xf32>
    %33 = vector.broadcast %31 : vector<1x40xf32> to vector<8x40xf32>
    %34 = arith.mulf %32, %33 : vector<8x40xf32>
    %35 = vector.extract_strided_slice %28 {offsets = [0, 1], sizes = [8, 1], strides = [1, 1]} : vector<8x2xf32> to vector<8x1xf32>
    %36 = vector.extract_strided_slice %29 {offsets = [1, 0], sizes = [1, 40], strides = [1, 1]} : vector<3x40xf32> to vector<1x40xf32>
    %37 = vector.broadcast %35 : vector<8x1xf32> to vector<8x40xf32>
    %38 = vector.broadcast %36 : vector<1x40xf32> to vector<8x40xf32>
    %39 = arith.mulf %37, %38 : vector<8x40xf32>
    %40 = arith.addf %34, %39 : vector<8x40xf32>
    %41 = vector.extract_strided_slice %29 {offsets = [2, 0], sizes = [1, 40], strides = [1, 1]} : vector<3x40xf32> to vector<1x40xf32>
    %42 = vector.broadcast %41 : vector<1x40xf32> to vector<8x40xf32>
    %43 = arith.addf %40, %42 : vector<8x40xf32>
    %cst_11 = arith.constant 2.000000e+01 : f32
    %44 = vector.broadcast %cst_11 : f32 to vector<8x40xf32>
    %45 = arith.minimumf %43, %44 : vector<8x40xf32>
    %46 = math.exp %45 : vector<8x40xf32>
    %cst_12 = arith.constant 2.000000e+00 : f32
    %47 = vector.broadcast %cst_12 : f32 to vector<8x40xf32>
    %48 = arith.addf %46, %47 : vector<8x40xf32>
    %49 = arith.mulf %46, %48 : vector<8x40xf32>
    %cst_13 = arith.constant 2.000000e+00 : f32
    %50 = vector.broadcast %cst_13 : f32 to vector<8x40xf32>
    %51 = arith.addf %49, %50 : vector<8x40xf32>
    %52 = tpu.reciprocal %51 {approx = true} : vector<8x40xf32> -> vector<8x40xf32>
    %53 = arith.mulf %51, %52 : vector<8x40xf32>
    %cst_14 = arith.constant 2.000000e+00 : f32
    %54 = vector.broadcast %cst_14 : f32 to vector<8x40xf32>
    %55 = arith.subf %54, %53 : vector<8x40xf32>
    %56 = arith.mulf %52, %55 : vector<8x40xf32>
    %57 = arith.mulf %43, %49 : vector<8x40xf32>
    %58 = arith.mulf %57, %56 : vector<8x40xf32>
    %59 = arith.addf %11, %58 : vector<8x40xf32>
    %c0_15 = arith.constant 0 : index
    %c0_16 = arith.constant 0 : index
    %60 = vector.load %arg3[%c0_15, %c0_16] : memref<43x128xf32, #tpu.memory_space<vmem>>, vector<40x128xf32>
    %c40 = arith.constant 40 : index
    %c0_17 = arith.constant 0 : index
    %61 = vector.load %arg3[%c40, %c0_17] : memref<43x128xf32, #tpu.memory_space<vmem>>, vector<3x128xf32>
    %cst_18 = arith.constant dense<0.000000e+00> : vector<8x128xf32>
    %62 = tpu.matmul %59, %60, %cst_18 {dimension_numbers = #tpu.dot_dimension_numbers<[1], [0], [0], [1], [0, 0, 1, 1], [], []>} : vector<8x40xf32>, vector<40x128xf32>, vector<8x128xf32> -> vector<8x128xf32>
    %63 = vector.extract_strided_slice %61 {offsets = [0, 0], sizes = [1, 128], strides = [1, 1]} : vector<3x128xf32> to vector<1x128xf32>
    %64 = vector.broadcast %63 : vector<1x128xf32> to vector<8x128xf32>
    %65 = arith.addf %62, %64 : vector<8x128xf32>
    %cst_19 = arith.constant 2.000000e+01 : f32
    %66 = vector.broadcast %cst_19 : f32 to vector<8x128xf32>
    %67 = arith.minimumf %65, %66 : vector<8x128xf32>
    %68 = math.exp %67 : vector<8x128xf32>
    %cst_20 = arith.constant 2.000000e+00 : f32
    %69 = vector.broadcast %cst_20 : f32 to vector<8x128xf32>
    %70 = arith.addf %68, %69 : vector<8x128xf32>
    %71 = arith.mulf %68, %70 : vector<8x128xf32>
    %cst_21 = arith.constant 2.000000e+00 : f32
    %72 = vector.broadcast %cst_21 : f32 to vector<8x128xf32>
    %73 = arith.addf %71, %72 : vector<8x128xf32>
    %74 = tpu.reciprocal %73 {approx = true} : vector<8x128xf32> -> vector<8x128xf32>
    %75 = arith.mulf %73, %74 : vector<8x128xf32>
    %cst_22 = arith.constant 2.000000e+00 : f32
    %76 = vector.broadcast %cst_22 : f32 to vector<8x128xf32>
    %77 = arith.subf %76, %75 : vector<8x128xf32>
    %78 = arith.mulf %74, %77 : vector<8x128xf32>
    %79 = arith.mulf %65, %71 : vector<8x128xf32>
    %80 = arith.mulf %79, %78 : vector<8x128xf32>
    %81 = vector.extract_strided_slice %61 {offsets = [1, 0], sizes = [1, 128], strides = [1, 1]} : vector<3x128xf32> to vector<1x128xf32>
    %82 = vector.broadcast %81 : vector<1x128xf32> to vector<8x128xf32>
    %83 = arith.mulf %80, %82 : vector<8x128xf32>
    %84 = vector.extract_strided_slice %61 {offsets = [2, 0], sizes = [1, 128], strides = [1, 1]} : vector<3x128xf32> to vector<1x128xf32>
    %85 = vector.broadcast %84 : vector<1x128xf32> to vector<8x128xf32>
    %86 = arith.addf %83, %85 : vector<8x128xf32>
    %c0_23 = arith.constant 0 : index
    %c0_24 = arith.constant 0 : index
    %87 = vector.load %arg4[%c0_23, %c0_24] : memref<8x128xf32, #tpu.memory_space<vmem>>, vector<8x128xf32>
    tpu.vector_store %arg4[%c0_23, %c0_24], %86 {strides = array<i32>} : memref<8x128xf32, #tpu.memory_space<vmem>>, vector<8x128xf32>,
    return
  }
  func.func @transform_0(%arg0: i32) -> (i32, i32) {
    %c0_i32 = arith.constant 0 : i32
    %c0_i32_0 = arith.constant 0 : i32
    return %arg0, %c0_i32 : i32, i32
  }
  func.func @transform_1(%arg0: i32) -> (i32, i32) {
    %c0_i32 = arith.constant 0 : i32
    %c0_i32_0 = arith.constant 0 : i32
    %c0_i32_1 = arith.constant 0 : i32
    return %c0_i32, %c0_i32_0 : i32, i32
  }
  func.func @transform_2(%arg0: i32) -> (i32, i32) {
    %c0_i32 = arith.constant 0 : i32
    %c0_i32_0 = arith.constant 0 : i32
    %c0_i32_1 = arith.constant 0 : i32
    return %c0_i32, %c0_i32_0 : i32, i32
  }
  func.func @transform_3(%arg0: i32) -> (i32, i32) {
    %c0_i32 = arith.constant 0 : i32
    %c0_i32_0 = arith.constant 0 : i32
    return %arg0, %c0_i32 : i32, i32
  }
}

</mosaic_0001>

<bundles_post_ra>
// kernel: tpu_custom_call.1
= control target key start
LH: loop header
LB: loop body
LE: loop exit
PB: predicated region body
PF: predicated region fallthrough
CT: control target
= control target key end

     0   :  { %8 = vsyncpa [#allocation3], 0  ;;  %s813_s0 = inlined_call_operand.vmem [shape: f32[16,3], index: 0, kind: input, shape index: {}]   ;;  %s814_s1 = inlined_call_operand.vmem [shape: f32[3,40], index: 1, kind: input, shape index: {}]   ;;  %s815_s2 = inlined_call_operand.hbm [shape: f32[43,128], index: 2, kind: input, shape index: {}]   ;;  %s816_s3 = inlined_call_operand.hbm [shape: f32[16,128], index: 3, kind: output, shape index: {}]  }
   0x1   :  { %9 = vsyncpa [#allocation4], 0 }
   0x2   :  { %11 = vsyncpa [#allocation4 + $0x1], 0  ;;  %s675_s12 = smov 0   ;;  %s677_s13 = smov 0  }
   0x3   :  { %s679_s14 = smov 0   ;;  %s681_s15 = smov 0  }
   0x4 LB: > { %s696_s16 = sadd.s32 4294967295, %s642_s15   ;;  %s434_s17 = sadd.s32 4294967294, %s642_s15   ;;  %s642_s15 = sphi %s681_s15, %s832_s15   ;;  %s638_s14 = sphi %s679_s14, %s831_s14   ;;  %s634_s13 = sphi %s677_s13, %s830_s13   ;;  %s630_s12 = sphi %s675_s12, %s829_s12  }
   0x5   : > { %s700_s18 = sadd.s32 1, %s642_s15   ;;  %s92_s19 = sadd.s32 1, %s638_s14 }
   0x6   : > { %s89_s20 = ssub.s32 %s642_s15, %s700_s18  ;;  %p102_p0 = scmp.ne.s32.totalorder %s638_s14, %s634_s13 }
   0x7   : > { %p90_p1 = scmp.eq.s32.totalorder %s89_s20, 0  ;;  %p103_p2 = scmp.eq.s32.totalorder %s696_s16, 1 }
   0x8   : > { %p108_p3 = scmp.ne.s32.totalorder %s634_s13, %s630_s12  ;;  %p109_p4 = scmp.eq.s32.totalorder %s434_s17, 1 }
   0x9   : > { %s711_s21 = scalar_select %p90_p1, %s638_s14, %s92_s19  }
   0xa   : > { %p713_p5 = por %p103_p2, %p102_p0  ;;  %p717_p6 = por %p109_p4, %p108_p3 }
   0xb   : > { %p435_p7 = scmp.ge.s32.totalorder %s642_s15, 1  ;;  %p116_p8 = scmp.lt.s32.totalorder %s642_s15, 3 }
   0xc   : > { %s820_s22 = scalar_select %p713_p5, 1, 0 }
   0xd   : > { %s821_s23 = scalar_select %p717_p6, 1, 0 }
   0xe   : > { %p817_p9 = scmp.eq.s32.totalorder %s696_s16, 0  ;;  %p724_p10 = pnand %p435_p7, %p116_p8 }
   0xf   : > { %s644_s25 = smov [#allocation2]   ;;  %s548_s30 = scalar_lea.hbm %s815_s2, 768 }
  0x10   : > { %s822_s24 = scalar_select %p724_p10, 1, 0 }
  0x11   : > { %s131_s26 = sshll.u32 %s644_s25, 4  ;;  %p482_p11 = pneg %p724_p10  ;;  %s132_s26 = int_to_ptr.vmem [resolvable:$true] %s131_s26 }
  0x12   : > { %p549_p13 = scmp.ne.s32.totalorder %s815_s2, %s548_s30  ;;  %p555_p3 = scmp.lt.u32.totalorder %s548_s30, %s815_s2 }
  0x13   : > { %p732_p12 = pnand %p817_p9, %p482_p11 }
  0x15   : > { %p550_p0 = pneg %p732_p12 }
  0x17   : > { %p551_p1 = pnand %p550_p0, %p549_p13 }
  0x19   : > { %p552_p2 = pneg %p551_p1 }
  0x1b   : > { %p557_p4 = pnand %p555_p3, %p552_p2 }
  0x1d   : > { %560 = shalt.err (!%p557_p4)
}
  0x1e   : > { %s561_s8 = scalar_lea.vmem %s132_s26, 768  ;;  %p569_p9 = scmp.lt.s32.totalorder %s132_s26, %s132_s26 }
  0x1f   : > { %p562_p7 = scmp.ne.s32.totalorder %s132_s26, %s561_s8  ;;  %p570_p6 = scmp.lt.s32.totalorder %s561_s8, %s561_s8 }
  0x21   : > { %p564_p8 = pnand %p562_p7, %p550_p0  ;;  %p571_p5 = por %p570_p6, %p569_p9 }
  0x23   : > { %p565_p11 = pneg %p564_p8 }
  0x25   : > { %p572_p10 = pnand %p571_p5, %p565_p11 }
  0x27   : > { %575 = shalt.err (!%p572_p10)
}
  0x28   : > { %s645_s9 = smov 128   ;;  %s646_s10 = smov 8  }
  0x29   : > { %485 = dma.hbm_to_vmem [thread:$0]  (!%p732_p12), %s815_s2, 768, %s132_s26, [#allocation3], %s645_s9, %s645_s9, %s646_s10  }
  0x2a   : > { %p824_p13 = scmp.ne.s32.totalorder %s822_s24, 0 }
  0x2b   : > { %p825_p1 = scmp.eq.s32.totalorder (!%p824_p13), %s696_s16, 0 }
  0x2c   : > { %154 = sbr.rel (%p824_p13) target bundleno = 535 (0x217), region = 32 }
  0x33   : > { %621 = dma.done.wait (%p825_p1), [#allocation3], 768   ;;  %p826_p0 = pmov %p825_p1 }
  0x34   : > { %p177_p5 = scmp.lt.s32.totalorder %s696_s16, 1  ;;  %v647_v0 = vmov 1   ;;  %v648_v1 = vmov 0   ;;  %v649_v11 = vmov 1.0   ;;  %v650_v15 = vmov 2   ;;  %v242_v16 = vld [vmem:[#allocation2] sm:$0xff] }
  0x35   : > { %623 = vsyncadd (%p826_p0), [#allocation3], 4294966528  ;;  %535 = vset.pattern.permute.xlu0 %v647_v0  ;;  %537 = vset.pattern.permute.xlu1 %v648_v1  ;;  %v243_v17 = vld [vmem:[#allocation2 + $0x8] sm:$0xff]  ;;  %v244_v18 = vld [vmem:[#allocation2 + $0x10] sm:$0xff]  ;;  %v651_v19 = vmov 0.0|0.0   ;;  %v652_v23 = vmov 0.0   ;;  %v185_v25 = vlaneseq }
  0x36   : > { %s178_s19 = scalar_select %p177_p5, %s696_s16, 1  ;;  %468 = vmatprep.subr.bf16.mxu0 %v651_v19  ;;  %v469_v20 = vpack.c.bf16 %v243_v17, %v242_v16  ;;  %v245_v21 = vld [vmem:[#allocation2 + $0x18] sm:$0xff]  ;;  %v246_v24 = vld [vmem:[#allocation2 + $0x20] sm:$0xff]  ;;  %vm653_vm2 = vmmov 0   ;;  %v203_v29 = vld [vmem:[%s814_s1] sm:$0x7] }
  0x37   : > { %v472_v22 = vpack.c.bf16 %v245_v21, %v244_v18  ;;  %465 = vmatprep.mubr.msk.f32.mxu0 %vm653_vm2, %v652_v23  ;;  %v210_v26 = vshrl.u32 %v185_v25, 7  ;;  %v186_v46 = vand.u32 127, %v185_v25  ;;  %vm252_vm4 = vcmask 326656   ;;  %v247_v56 = vld [vmem:[#allocation2 + $0x28] sm:$0x7]  ;;  %s174_s29 = sand.u32 1, %s634_s13  }
  0x38   : > { %s441_s20 = sshll.u32 %s178_s19, 3  ;;  %470 = vmatpush3.bf16.msra.mxu0 %v469_v20  ;;  %s440_s30 = sshll.u32 %s174_s29, 3 }
  0x39   : > { %s180_s24 = scalar_lea.vmem %s813_s0, %s441_s20  ;;  %471 = vmatprep.subr.bf16.mxu0 %v651_v19  ;;  %v211_v27 = vsub.s32 0, %v210_v26  ;;  %v220_v28 = vsub.s32 1, %v210_v26  ;;  %v226_v33 = vsub.s32 2, %v210_v26  ;;  %s446_s4 = sshll.u32 %s696_s16, 7 }
  0x3a   : > { %v181_v2 = vld [vmem:[%s180_s24] sm:$0xff]  ;;  %s176_s5 = scalar_lea.vmem [#allocation5], %s440_s30  ;;  %s771_s9 = scalar_lea.hbm %s816_s3, %s446_s4 }
  0x3b   : > { %v443_v3 = vclamps-f32 %v181_v2, 9999999.0  ;;  %vm182_vm0 = vcmp.gt.f32.partialorder %v181_v2, 7.0  ;;  %v212_v31 = vrot.slane %v203_v29, %v211_v27  ;;  %v221_v32 = vrot.slane %v203_v29, %v220_v28  ;;  %s363_s6 = sshll.u32 %s176_s5, 4  ;;  %s350_s10 = scalar_lea.sflag [#allocation4], %s174_s29  ;;  %s773_s6 = int_to_ptr.vmem [resolvable:$true] %s363_s6 }
  0x3c   : > { %v183_v4 = vsel %vm182_vm0, 7.0, %v181_v2  ;;  %473 = vmatpush3.bf16.msra.mxu0 %v472_v22  ;;  %v227_v36 = vrot.slane %v203_v29, %v226_v33  ;;  %v251_v57 = vrot.slane %v247_v56, %v211_v27  ;;  %s576_s11 = scalar_lea.vmem %s773_s6, 128  ;;  %p827_p9 = scmp.ne.s32.totalorder %s820_s22, 0 }
  0x3d   : > { %v197_v5 = vand.u32 2147483647, %v443_v3  ;;  %v474_v6 = vtrunc.f32 %v183_v4  ;;  %vm195_vm1 = vcmp.lt.f32.partialorder %v443_v3, 0.0  ;;  %463 = vmatprep.subr.mxu0 %v652_v23  ;;  %p577_p6 = scmp.ne.s32.totalorder %s773_s6, %s576_s11  ;;  %s654_s16 = smov [#allocation5]  }
  0x3e   : > { %v196_v12 = vsel %vm195_vm1, -1.0, %v649_v11  ;;  %s580_s17 = sshll.u32 %s654_s16, 4  ;;  %s581_s17 = int_to_ptr.vmem [resolvable:$false] %s580_s17 }
  0x3f   : > { %v198_v7 = vadd.f32 1.0, %v197_v5  ;;  %v475_v8 = vcvt.f32.s32 %v474_v6  ;;  %p578_p10 = pnand %p577_p6, %p827_p9  ;;  %s582_s19 = scalar_lea.vmem %s581_s17, 256 }
  0x40   : > { %464 = vmatpush3.msra.mxu0 %v246_v24  ;;  %p583_p2 = scmp.lt.s32.totalorder %s773_s6, %s581_s17  ;;  %p584_p3 = scmp.lt.s32.totalorder %s582_s19, %s576_s11 }
  0x41   : > { %538 = vlog2.f32 %v198_v7  ;;  %188 = vperm.xlu1 %537, %v475_v8   ;;  %v341_v8 = vrot.slane %v247_v56, %v220_v28  ;;  %p579_p12 = pneg %p578_p10 }
  0x42   : > { %p585_p4 = por %p584_p3, %p583_p2 }
  0x44   : > { %p586_p7 = pnand %p585_p4, %p579_p12 }
  0x4b   : > { %v539_v9 = vpop.eup %538 }
  0x4c   : > { %v200_v10 = vmul.f32 0.6931472, %v539_v9 }
  0x4e   : > { %v201_v13 = vmul.f32 0.4342945, %v200_v10  ;;  %v346_v10 = vrot.slane %v247_v56, %v226_v33 }
  0x50   : > { %v202_v14 = vmul.f32 %v201_v13, %v196_v12 }
  0x52   : > { %206 = vperm.xlu0 %535, %v202_v14  }
  0x56   : > { %536 = vset.pattern.permute.xlu0 %v650_v15 }
  0x57   : > { %215 = vperm.xlu0 %536, %v202_v14  }
  0xc0   : > { %v189_v48 = vpop.permute.xlu1 %188 }
  0xc1   : > { %vm190_vm3 = vcmp.eq.s32.totalorder %v186_v46, %v189_v48 }
  0xc2   : > { %v442_v53 = vsel %vm190_vm3, 1.0, %v652_v23 }
  0xd1   : > { %v207_v30 = vpop.permute.xlu0 %206 }
  0xd2   : > { %v213_v35 = vmul.f32 %v212_v31, %v207_v30 }
  0xd6   : > { %v216_v34 = vpop.permute.xlu0 %215 }
  0xd7   : > { %v222_v37 = vmul.f32 %v221_v32, %v216_v34 }
  0xd9   : > { %v223_v38 = vadd.f32 %v222_v37, %v213_v35 }
  0xdb   : > { %v228_v39 = vadd.f32 %v227_v36, %v223_v38 }
  0xdd   : > { %v229_v40 = vmin.f32 %v228_v39, 20.0 }
  0xdf   : > { %v230_v41 = vmul.f32 1.442695, %v229_v40 }
  0xe1   : > { %540 = vpow2.f32 %v230_v41 }
  0xeb   : > { %v541_v42 = vpop.eup %540 }
  0xec   : > { %v232_v43 = vadd.f32 2.0, %v541_v42 }
  0xee   : > { %v233_v44 = vmul.f32 %v541_v42, %v232_v43 }
  0xf0   : > { %v234_v45 = vadd.f32 2.0, %v233_v44  ;;  %v239_v52 = vmul.f32 %v233_v44, %v228_v39 }
  0xf2   : > { %542 = vrcp.f32 %v234_v45 }
  0xfc   : > { %v543_v47 = vpop.eup %542 }
  0xfd   : > { %v236_v49 = vmul.f32 %v543_v47, %v234_v45 }
  0xff   : > { %v237_v50 = vsub.f32 2.0, %v236_v49 }
 0x101   : > { %v238_v51 = vmul.f32 %v543_v47, %v237_v50 }
 0x103   : > { %v240_v54 = vmul.f32 %v239_v52, %v238_v51 }
 0x105   : > { %v241_v55 = vadd.f32 %v442_v53, %v240_v54 }
 0x107   : > { %466 = vmatmul.mubr.msk.f32.vlgmr.msra.gmra.mrb[0].mxu0 %vm252_vm4, %v241_v55 }
 0x1da   : > { %v322_v58 = vpop.f32.mrb[0].mxu0 }
 0x1db   : > { %v323_v59 = vadd.f32 %v322_v58, %v251_v57  ;;  %v467_v60 = vpop.f32.mrb[1].mxu0 }
 0x1dd   : > { %v326_v61 = vmin.f32 %v323_v59, 20.0 }
 0x1df   : > { %v327_v62 = vmul.f32 1.442695, %v326_v61 }
 0x1e1   : > { %544 = vpow2.f32 %v327_v62 }
 0x1eb   : > { %v545_v63 = vpop.eup %544 }
 0x1ec   : > { %v329_v0 = vadd.f32 2.0, %v545_v63 }
 0x1ee   : > { %v330_v1 = vmul.f32 %v545_v63, %v329_v0 }
 0x1f0   : > { %v331_v2 = vadd.f32 2.0, %v330_v1  ;;  %v336_v7 = vmul.f32 %v330_v1, %v323_v59 }
 0x1f2   : > { %546 = vrcp.f32 %v331_v2 }
 0x1fc   : > { %v547_v3 = vpop.eup %546 }
 0x1fd   : > { %v333_v4 = vmul.f32 %v547_v3, %v331_v2 }
 0x1ff   : > { %v334_v5 = vsub.f32 2.0, %v333_v4 }
 0x201   : > { %v335_v6 = vmul.f32 %v547_v3, %v334_v5 }
 0x203   : > { %v337_v9 = vmul.f32 %v336_v7, %v335_v6 }
 0x205   : > { %v342_v11 = vmul.f32 %v341_v8, %v337_v9 }
 0x207   : > { %v347_v12 = vadd.f32 %v346_v10, %v342_v11 }
 0x209   : > { %348 = vst [vmem:[%s176_s5] sm:$0xff] %v347_v12 }
 0x20a   : > { %589 = shalt.err (!%p586_p7)
}
 0x20b   : > { %s590_s20 = scalar_lea.hbm %s771_s9, 128  ;;  %s594_s24 = scalar_lea.hbm %s816_s3, 256 }
 0x20c   : > { %p591_p8 = scmp.ne.s32.totalorder %s771_s9, %s590_s20  ;;  %p595_p1 = scmp.lt.u32.totalorder %s771_s9, %s816_s3 }
 0x20d   : > { %p596_p0 = scmp.lt.u32.totalorder %s594_s24, %s590_s20  ;;  %p598_p6 = scmp.lt.u32.totalorder %s590_s20, %s771_s9 }
 0x20e   : > { %p592_p11 = pnand %p591_p8, %p827_p9 }
 0x20f   : > { %p597_p5 = por %p596_p0, %p595_p1 }
 0x210   : > { %p593_p13 = pneg %p592_p11 }
 0x211   : > { %p599_p10 = por %p598_p6, %p597_p5 }
 0x213   : > { %p600_p12 = pnand %p599_p10, %p593_p13 }
 0x215   : > { %603 = shalt.err (!%p600_p12)
}
 0x216   : > { %480 = dma.vmem_to_hbm [thread:$0]  (%p827_p9), %s773_s6, 128, %s771_s9, %s350_s10  }
 0x217 PF: > { %p492_p2 = scmp.ge.s32.totalorder %s642_s15, 2  ;;  %s375_s29 = sand.u32 1, %s630_s12  }
 0x218   : > { %p828_p3 = scmp.ne.s32.totalorder %s821_s23, 0  ;;  %s376_s30 = scalar_lea.sflag [#allocation4], %s375_s29 }
 0x21a   : > { %p487_p4 = pnand %p492_p2, %p828_p3 }
 0x21c   : > { %625 = dma.done.wait (!%p487_p4), %s376_s30, 128  }
 0x21d   : > { %627 = vsyncadd (!%p487_p4), %s376_s30, 4294967168  ;;  %p14_p7 = scmp.ge.s32.totalorder %s700_s18, 4   ;;  %s829_s12 = smov %s634_s13 }
 0x21e   : > { %s830_s13 = smov %s638_s14  ;;  %s831_s14 = smov %s711_s21 }
 0x21f   : > { %s832_s15 = smov %s700_s18  ;;  %16 = sbr.rel (!%p14_p7) target bundleno = 4 (0x4), region = 72 }
 0x226   :  { %381 = vsyncpa [#allocation3], 1 }
 0x227   :  { %383 = vsyncpa [#allocation3 + $0x1], 1 }
 0x228   :  { %384 = vsyncpa [#allocation4], 1 }
 0x229   :  { %386 = vsyncpa [#allocation4 + $0x1], 1 }

</bundles_post_ra>
